<compile_context>
chip_gen: v6e
topology: v6e:2x2x1
jax: 0.10.0
libtpu: 0.0.40
codegen_flags: <defaults>
</compile_context>

<pallas_src>
import numpy as np
import jax
import jax.numpy as jnp
from jax import lax
from jax.experimental import pallas as pl
from jax.experimental.pallas import tpu as pltpu


def _ceil_to(x, m):
    return -(-x // m) * m


def capsule_bilstm_kernel(xf_ref,    # (T, TB, 4H) bf16  fwd gate pre-acts (+bias), order [i,f,o,g]
                          xb_ref,    # (TB, 4H)    bf16  bwd gate pre-acts at t = T-1 (+bias)
                          whh_ref,   # (H, 4H)     bf16  fwd recurrent weights, packed [i,f,o,g]
                          wcap_ref,  # (2H, C)     bf16  capsule Linear(2H -> C)
                          bcap_ref,  # (1, C)      f32
                          wfc_ref,   # (C, O_pad)  bf16  fc Linear(C -> O_pad)
                          bfc_ref,   # (1, O_pad)  f32
                          out_ref):  # (TB, O_pad) f32
    T = xf_ref.shape[0]
    H = whh_ref.shape[0]

    whh = whh_ref[...]                              # (H, 4H) packed recurrent weights

    def activate(gates):                            # gates: (TB, 4H) f32, order [i,f,o,g]
        sig = jax.nn.sigmoid(gates[:, 0:3 * H])     # one wide EUP issue for i, f, o
        g = jnp.tanh(gates[:, 3 * H:4 * H])
        return sig[:, 0:H], sig[:, H:2 * H], sig[:, 2 * H:3 * H], g

    # ---- t = 0: zero initial state -> h @ W_hh contributes nothing, skip it ----
    i, f, o, g = activate(xf_ref[0].astype(jnp.float32))
    c = i * g
    h = o * jnp.tanh(c)

    def step(gx, h, c):
        # Single packed (TB,H)@(H,4H) MXU push per step (f32 accumulation).
        gates = gx.astype(jnp.float32) + jnp.dot(
            h.astype(jnp.bfloat16), whh, preferred_element_type=jnp.float32)
        i, f, o, g = activate(gates)
        c_new = f * c + i * g
        return o * jnp.tanh(c_new), c_new

    if T <= 32:                                     # small static T: full unroll
        for t in range(1, T):
            h, c = step(xf_ref[t], h, c)
    else:                                           # large T: chunk-unrolled loop
        def body(t, carry):
            h, c = carry
            return step(xf_ref[t], h, c)
        h, c = lax.fori_loop(1, T, body, (h, c), unroll=8)

    # ---- backward direction: lstm_out[:, -1, H:] is the backward cell's FIRST
    #      step (input x[T-1], zero initial state => c_b = i_b * g_b). ----
    i_b, _, o_b, g_b = activate(xb_ref[...].astype(jnp.float32))
    h_b = o_b * jnp.tanh(i_b * g_b)

    # ---- fused capsule layer on [h_fwd || h_bwd], then fc + sigmoid (lane-dense) ----
    hcat = jnp.concatenate([h, h_b], axis=-1).astype(jnp.bfloat16)        # (TB, 2H)
    caps = (jnp.dot(hcat, wcap_ref[...], preferred_element_type=jnp.float32)
            + bcap_ref[...])
    logits = (jnp.dot(caps.astype(jnp.bfloat16), wfc_ref[...],
                      preferred_element_type=jnp.float32) + bfc_ref[...])
    out_ref[...] = jax.nn.sigmoid(logits)


def _tpu_defaults():
    """(default batch tile, VMEM capacity bytes) for the local TPU generation."""
    kind = ""
    try:
        kind = jax.devices()[0].device_kind.lower()
    except Exception:
        pass
    vmem_cap = None
    try:
        vmem_cap = int(pltpu.get_tpu_info().vmem_capacity_bytes)
    except Exception:
        vmem_cap = None
    if vmem_cap is None:
        vmem_cap = (128 << 20) if ("v5" in kind or "v6" in kind) else (64 << 20)
    # v6e/v7x MXU is 256 wide -> 256-row batch tiles; v5e (128-wide MXU) keeps 128.
    batch_tile = 256 if ("v6" in kind or "v7" in kind) else 128
    return batch_tile, vmem_cap


def _reorder_gates(a, H):
    """PyTorch LSTM gate order [i, f, g, o] -> [i, f, o, g] (sigmoid gates contiguous)."""
    return jnp.concatenate(
        [a[..., 0:2 * H], a[..., 3 * H:4 * H], a[..., 2 * H:3 * H]], axis=-1)


def capsule_bilstm_forward(x_tokens, params, *, batch_tile=None):
    """x_tokens: (B, T) int32 token ids.  Returns (B, output_dim) float32."""
    emb = params["embedding"]                        # (V, E), row 0 zeros (padding_idx)
    B, T = x_tokens.shape
    H = params["w_hh_f"].shape[0]
    G = 4 * H
    C = params["w_cap"].shape[1]
    O = params["w_fc"].shape[1]

    default_tile, vmem_cap = _tpu_defaults()
    if batch_tile is None:
        batch_tile = default_tile

    # ---- fold the input projection into the embedding table (weights are static):
    #      tbl = emb @ W_ih + b -> the gather directly yields gate pre-activations.
    w_ih_f = _reorder_gates(params["w_ih_f"], H)
    w_ih_b = _reorder_gates(params["w_ih_b"], H)
    b_f = _reorder_gates(params["b_f"], H)
    b_b = _reorder_gates(params["b_b"], H)
    tbl_f = (emb @ w_ih_f + b_f).astype(jnp.bfloat16)         # (V, 4H)
    tbl_b = (emb @ w_ih_b + b_b).astype(jnp.bfloat16)         # (V, 4H)

    # Gathers with the time-major transpose fused in; backward dir only needs t=T-1.
    xf = jnp.take(tbl_f, x_tokens.T, axis=0)                  # (T, B, 4H) bf16
    xb = jnp.take(tbl_b, x_tokens[:, T - 1], axis=0)          # (B, 4H)    bf16

    # ---- batch tiling: sublane-aligned; split single-tile batches into >=2
    #      programs so v7x's second TensorCore gets work (parallel grid axis). ----
    B8 = _ceil_to(B, 8)
    if B8 > batch_tile:
        TB = batch_tile
    elif B8 > 8:
        TB = _ceil_to(-(-B8 // 2), 8)
    else:
        TB = 8
    B_pad = _ceil_to(B8, TB)
    if B_pad != B:
        xf = jnp.pad(xf, ((0, 0), (0, B_pad - B), (0, 0)))
        xb = jnp.pad(xb, ((0, B_pad - B), (0, 0)))

    # Lane-dense output: pad fc output dim to a multiple of 128 (sliced off below).
    O_pad = _ceil_to(O, 128)
    w_fc = jnp.pad(params["w_fc"], ((0, 0), (0, O_pad - O))).astype(jnp.bfloat16)
    b_fc = jnp.pad(params["b_fc"], ((0, 0), (0, O_pad - O))).astype(jnp.float32)

    whh = _reorder_gates(params["w_hh_f"], H).astype(jnp.bfloat16)        # (H, 4H)
    w_cap = params["w_cap"].astype(jnp.bfloat16)
    b_cap = params["b_cap"].astype(jnp.float32)

    def rep(shape):  # replicated (grid-invariant) full-array block
        return pl.BlockSpec(shape, lambda b, _n=len(shape): (0,) * _n)

    in_specs = [
        pl.BlockSpec((T, TB, G), lambda b: (0, b, 0)),
        pl.BlockSpec((TB, G), lambda b: (b, 0)),
        rep((H, G)),
        rep((2 * H, C)), rep((1, C)),
        rep((C, O_pad)), rep((1, O_pad)),
    ]
    out_specs = pl.BlockSpec((TB, O_pad), lambda b: (b, 0))

    # ---- generation-aware VMEM budget (bf16 gate tensor keeps larger TB/T under
    #      v7x's 64 MiB; v5e/v6e's 128 MiB allows much more headroom). ----
    est = (
        2 * T * TB * G * 2                  # xf tile, bf16, double-buffered
        + 2 * TB * G * 2                    # xb tile
        + 2 * H * G * 2                     # recurrent weights, bf16
        + 2 * (2 * H * C + C * O_pad) * 2   # capsule / fc weights, bf16
        + 2 * (C + O_pad) * 4               # biases, f32
        + 2 * TB * O_pad * 4                # output tile, double-buffered
        + 6 * TB * G * 4                    # per-step f32 working set (gates, h, c)
    )
    vmem_limit = int(min(max(2 * est, 8 << 20), int(0.6 * vmem_cap)))

    out = pl.pallas_call(
        capsule_bilstm_kernel,
        out_shape=jax.ShapeDtypeStruct((B_pad, O_pad), jnp.float32),
        grid=(B_pad // TB,),
        in_specs=in_specs,
        out_specs=out_specs,
        compiler_params=pltpu.CompilerParams(
            dimension_semantics=("parallel",),
            vmem_limit_bytes=vmem_limit),
    )(xf, xb, whh, w_cap, b_cap, w_fc, b_fc)
    return out[:B, :O]


def init_params(key, vocab_size, embed_dim, hidden_dim, output_dim,
                num_capsules=10, capsule_dim=16):
    """Deterministic synthetic parameters matching the PyTorch module's shapes."""
    H, E = hidden_dim, embed_dim
    C = num_capsules * capsule_dim
    ks = jax.random.split(key, 12)
    s_lstm = 1.0 / np.sqrt(H)

    def u(k, shape, scale):
        return jax.random.uniform(k, shape, jnp.float32, -scale, scale)

    emb = u(ks[0], (vocab_size, E), 1.0)
    emb = emb.at[0].set(0.0)                                  # padding_idx=0

    return {
        "embedding": emb,
        # LSTM weights stored transposed: (in, 4H); PyTorch gate order i, f, g, o.
        "w_ih_f": u(ks[1], (E, 4 * H), s_lstm),
        "w_hh_f": u(ks[2], (H, 4 * H), s_lstm),
        "b_f":    u(ks[3], (1, 4 * H), s_lstm) + u(ks[4], (1, 4 * H), s_lstm),  # b_ih+b_hh
        "w_ih_b": u(ks[5], (E, 4 * H), s_lstm),
        "w_hh_b": u(ks[6], (H, 4 * H), s_lstm),
        "b_b":    u(ks[7], (1, 4 * H), s_lstm) + u(ks[8], (1, 4 * H), s_lstm),
        # capsule_layer: Linear(2H, C); stored as (2H, C)
        "w_cap":  u(ks[9], (2 * H, C), 1.0 / np.sqrt(2 * H)),
        "b_cap":  u(ks[10], (1, C), 1.0 / np.sqrt(2 * H)),
        # fc: Linear(C, output_dim); stored as (C, O)
        "w_fc":   u(ks[11], (C, output_dim), 1.0 / np.sqrt(C)),
        "b_fc":   jnp.zeros((1, output_dim), jnp.float32),
    }


def reference_forward(x_tokens, params):
    """Pure-JAX f32 reference: full bidirectional LSTM, take lstm_out[:, -1, :]."""
    emb = jnp.take(params["embedding"], x_tokens, axis=0)     # (B, T, E)
    B, T, E = emb.shape
    H = params["w_hh_f"].shape[0]

    def cell(x_t, h, c, w_ih, w_hh, b):
        g = x_t @ w_ih + h @ w_hh + b
        i = jax.nn.sigmoid(g[:, 0 * H:1 * H])
        f = jax.nn.sigmoid(g[:, 1 * H:2 * H])
        gg = jnp.tanh(g[:, 2 * H:3 * H])
        o = jax.nn.sigmoid(g[:, 3 * H:4 * H])
        c = f * c + i * gg
        return o * jnp.tanh(c), c

    h = jnp.zeros((B, H)); c = jnp.zeros((B, H))
    for t in range(T):
        h, c = cell(emb[:, t], h, c, params["w_ih_f"], params["w_hh_f"], params["b_f"])
    h_fwd_last = h
    h = jnp.zeros((B, H)); c = jnp.zeros((B, H))
    bwd_first = None
    for t in range(T - 1, -1, -1):
        h, c = cell(emb[:, t], h, c, params["w_ih_b"], params["w_hh_b"], params["b_b"])
        if t == T - 1:
            bwd_first = h
    last = jnp.concatenate([h_fwd_last, bwd_first], axis=-1)   # lstm_out[:, -1, :]
    caps = last @ params["w_cap"] + params["b_cap"]
    logits = caps @ params["w_fc"] + params["b_fc"]
    return jax.nn.sigmoid(logits)


if __name__ == "__main__":
    vocab_size, embed_dim, hidden_dim, output_dim = 50, 32, 32, 4
    B, T = 2, 8

    key = jax.random.PRNGKey(0)
    k_params, k_tokens = jax.random.split(key)
    params = init_params(k_params, vocab_size, embed_dim, hidden_dim, output_dim)
    x_tokens = jax.random.randint(k_tokens, (B, T), 0, vocab_size, dtype=jnp.int32)

    out = jax.block_until_ready(capsule_bilstm_forward(x_tokens, params))

    ref = reference_forward(x_tokens, params)
    assert out.shape == (B, output_dim)
    # bf16 MXU operands / bf16 gate table with f32 accumulation => relaxed tolerance.
    np.testing.assert_allclose(np.asarray(out), np.asarray(ref), rtol=5e-2, atol=5e-2)

    print("KERNEL_OK")
</pallas_src>

<mosaic_0001>
module attributes {stable_mosaic.version = 11 : i64} {
  func.func @capsule_bilstm_kernel(%arg0: i32, %arg1: memref<8x8x128xbf16, #tpu.memory_space<vmem>>, %arg2: memref<8x128xbf16, #tpu.memory_space<vmem>>, %arg3: memref<32x128xbf16, #tpu.memory_space<vmem>>, %arg4: memref<64x160xbf16, #tpu.memory_space<vmem>>, %arg5: memref<1x160xf32, #tpu.memory_space<vmem>>, %arg6: memref<160x128xbf16, #tpu.memory_space<vmem>>, %arg7: memref<1x128xf32, #tpu.memory_space<vmem>>, %arg8: memref<8x128xf32, #tpu.memory_space<vmem>>) attributes {dimension_semantics = [#tpu.dimension_semantics<parallel>], iteration_bounds = array<i64: 1>, scalar_prefetch = 0 : i64, scratch_operands = 0 : i64, tpu.core_type = #tpu.core_type<tc>, window_params = [{transform_indices = @transform_0, window_bounds = array<i64: 8, 8, 128>}, {transform_indices = @transform_1, window_bounds = array<i64: 8, 128>}, {pipeline_mode = #tpu.pipeline_mode<synchronous>, transform_indices = @transform_2, window_bounds = array<i64: 32, 128>}, {pipeline_mode = #tpu.pipeline_mode<synchronous>, transform_indices = @transform_3, window_bounds = array<i64: 64, 160>}, {pipeline_mode = #tpu.pipeline_mode<synchronous>, transform_indices = @transform_4, window_bounds = array<i64: 1, 160>}, {pipeline_mode = #tpu.pipeline_mode<synchronous>, transform_indices = @transform_5, window_bounds = array<i64: 160, 128>}, {pipeline_mode = #tpu.pipeline_mode<synchronous>, transform_indices = @transform_6, window_bounds = array<i64: 1, 128>}, {transform_indices = @transform_7, window_bounds = array<i64: 8, 128>}]} {
    %c0 = arith.constant 0 : index
    %c0_0 = arith.constant 0 : index
    %0 = vector.load %arg3[%c0, %c0_0] : memref<32x128xbf16, #tpu.memory_space<vmem>>, vector<32x128xbf16>
    %c0_1 = arith.constant 0 : index
    %c0_2 = arith.constant 0 : index
    %c0_3 = arith.constant 0 : index
    %1 = vector.load %arg1[%c0_1, %c0_2, %c0_3] : memref<8x8x128xbf16, #tpu.memory_space<vmem>>, vector<1x8x128xbf16>
    %2 = vector.shape_cast %1 : vector<1x8x128xbf16> to vector<8x128xbf16>
    %3 = arith.extf %2 : vector<8x128xbf16> to vector<8x128xf32>
    %4 = vector.extract_strided_slice %3 {offsets = [0, 0], sizes = [8, 96], strides = [1, 1]} : vector<8x128xf32> to vector<8x96xf32>
    %5 = arith.negf %4 : vector<8x96xf32>
    %6 = math.exp %5 : vector<8x96xf32>
    %cst = arith.constant 1.000000e+00 : f32
    %7 = vector.broadcast %cst : f32 to vector<8x96xf32>
    %8 = arith.addf %7, %6 : vector<8x96xf32>
    %9 = arith.divf %7, %8 : vector<8x96xf32>
    %10 = vector.extract_strided_slice %3 {offsets = [0, 96], sizes = [8, 32], strides = [1, 1]} : vector<8x128xf32> to vector<8x32xf32>
    %11 = math.tanh %10 : vector<8x32xf32>
    %12 = vector.extract_strided_slice %9 {offsets = [0, 0], sizes = [8, 32], strides = [1, 1]} : vector<8x96xf32> to vector<8x32xf32>
    %13 = vector.extract_strided_slice %9 {offsets = [0, 64], sizes = [8, 32], strides = [1, 1]} : vector<8x96xf32> to vector<8x32xf32>
    %14 = arith.mulf %12, %11 : vector<8x32xf32>
    %15 = math.tanh %14 : vector<8x32xf32>
    %16 = arith.mulf %13, %15 : vector<8x32xf32>
    %c1 = arith.constant 1 : index
    %c0_4 = arith.constant 0 : index
    %c0_5 = arith.constant 0 : index
    %17 = vector.load %arg1[%c1, %c0_4, %c0_5] : memref<8x8x128xbf16, #tpu.memory_space<vmem>>, vector<1x8x128xbf16>
    %18 = vector.shape_cast %17 : vector<1x8x128xbf16> to vector<8x128xbf16>
    %19 = arith.extf %18 : vector<8x128xbf16> to vector<8x128xf32>
    %20 = arith.truncf %16 : vector<8x32xf32> to vector<8x32xbf16>
    %cst_6 = arith.constant dense<0.000000e+00> : vector<8x128xf32>
    %21 = tpu.matmul %20, %0, %cst_6 {dimension_numbers = #tpu.dot_dimension_numbers<[1], [0], [0], [1], [0, 0, 1, 1], [], []>} : vector<8x32xbf16>, vector<32x128xbf16>, vector<8x128xf32> -> vector<8x128xf32>
    %22 = arith.addf %19, %21 : vector<8x128xf32>
    %23 = vector.extract_strided_slice %22 {offsets = [0, 0], sizes = [8, 96], strides = [1, 1]} : vector<8x128xf32> to vector<8x96xf32>
    %24 = arith.negf %23 : vector<8x96xf32>
    %25 = math.exp %24 : vector<8x96xf32>
    %cst_7 = arith.constant 1.000000e+00 : f32
    %26 = vector.broadcast %cst_7 : f32 to vector<8x96xf32>
    %27 = arith.addf %26, %25 : vector<8x96xf32>
    %28 = arith.divf %26, %27 : vector<8x96xf32>
    %29 = vector.extract_strided_slice %22 {offsets = [0, 96], sizes = [8, 32], strides = [1, 1]} : vector<8x128xf32> to vector<8x32xf32>
    %30 = math.tanh %29 : vector<8x32xf32>
    %31 = vector.extract_strided_slice %28 {offsets = [0, 0], sizes = [8, 32], strides = [1, 1]} : vector<8x96xf32> to vector<8x32xf32>
    %32 = vector.extract_strided_slice %28 {offsets = [0, 32], sizes = [8, 32], strides = [1, 1]} : vector<8x96xf32> to vector<8x32xf32>
    %33 = vector.extract_strided_slice %28 {offsets = [0, 64], sizes = [8, 32], strides = [1, 1]} : vector<8x96xf32> to vector<8x32xf32>
    %34 = arith.mulf %32, %14 : vector<8x32xf32>
    %35 = arith.mulf %31, %30 : vector<8x32xf32>
    %36 = arith.addf %34, %35 : vector<8x32xf32>
    %37 = math.tanh %36 : vector<8x32xf32>
    %38 = arith.mulf %33, %37 : vector<8x32xf32>
    %c2 = arith.constant 2 : index
    %c0_8 = arith.constant 0 : index
    %c0_9 = arith.constant 0 : index
    %39 = vector.load %arg1[%c2, %c0_8, %c0_9] : memref<8x8x128xbf16, #tpu.memory_space<vmem>>, vector<1x8x128xbf16>
    %40 = vector.shape_cast %39 : vector<1x8x128xbf16> to vector<8x128xbf16>
    %41 = arith.extf %40 : vector<8x128xbf16> to vector<8x128xf32>
    %42 = arith.truncf %38 : vector<8x32xf32> to vector<8x32xbf16>
    %cst_10 = arith.constant dense<0.000000e+00> : vector<8x128xf32>
    %43 = tpu.matmul %42, %0, %cst_10 {dimension_numbers = #tpu.dot_dimension_numbers<[1], [0], [0], [1], [0, 0, 1, 1], [], []>} : vector<8x32xbf16>, vector<32x128xbf16>, vector<8x128xf32> -> vector<8x128xf32>
    %44 = arith.addf %41, %43 : vector<8x128xf32>
    %45 = vector.extract_strided_slice %44 {offsets = [0, 0], sizes = [8, 96], strides = [1, 1]} : vector<8x128xf32> to vector<8x96xf32>
    %46 = arith.negf %45 : vector<8x96xf32>
    %47 = math.exp %46 : vector<8x96xf32>
    %cst_11 = arith.constant 1.000000e+00 : f32
    %48 = vector.broadcast %cst_11 : f32 to vector<8x96xf32>
    %49 = arith.addf %48, %47 : vector<8x96xf32>
    %50 = arith.divf %48, %49 : vector<8x96xf32>
    %51 = vector.extract_strided_slice %44 {offsets = [0, 96], sizes = [8, 32], strides = [1, 1]} : vector<8x128xf32> to vector<8x32xf32>
    %52 = math.tanh %51 : vector<8x32xf32>
    %53 = vector.extract_strided_slice %50 {offsets = [0, 0], sizes = [8, 32], strides = [1, 1]} : vector<8x96xf32> to vector<8x32xf32>
    %54 = vector.extract_strided_slice %50 {offsets = [0, 32], sizes = [8, 32], strides = [1, 1]} : vector<8x96xf32> to vector<8x32xf32>
    %55 = vector.extract_strided_slice %50 {offsets = [0, 64], sizes = [8, 32], strides = [1, 1]} : vector<8x96xf32> to vector<8x32xf32>
    %56 = arith.mulf %54, %36 : vector<8x32xf32>
    %57 = arith.mulf %53, %52 : vector<8x32xf32>
    %58 = arith.addf %56, %57 : vector<8x32xf32>
    %59 = math.tanh %58 : vector<8x32xf32>
    %60 = arith.mulf %55, %59 : vector<8x32xf32>
    %c3 = arith.constant 3 : index
    %c0_12 = arith.constant 0 : index
    %c0_13 = arith.constant 0 : index
    %61 = vector.load %arg1[%c3, %c0_12, %c0_13] : memref<8x8x128xbf16, #tpu.memory_space<vmem>>, vector<1x8x128xbf16>
    %62 = vector.shape_cast %61 : vector<1x8x128xbf16> to vector<8x128xbf16>
    %63 = arith.extf %62 : vector<8x128xbf16> to vector<8x128xf32>
    %64 = arith.truncf %60 : vector<8x32xf32> to vector<8x32xbf16>
    %cst_14 = arith.constant dense<0.000000e+00> : vector<8x128xf32>
    %65 = tpu.matmul %64, %0, %cst_14 {dimension_numbers = #tpu.dot_dimension_numbers<[1], [0], [0], [1], [0, 0, 1, 1], [], []>} : vector<8x32xbf16>, vector<32x128xbf16>, vector<8x128xf32> -> vector<8x128xf32>
    %66 = arith.addf %63, %65 : vector<8x128xf32>
    %67 = vector.extract_strided_slice %66 {offsets = [0, 0], sizes = [8, 96], strides = [1, 1]} : vector<8x128xf32> to vector<8x96xf32>
    %68 = arith.negf %67 : vector<8x96xf32>
    %69 = math.exp %68 : vector<8x96xf32>
    %cst_15 = arith.constant 1.000000e+00 : f32
    %70 = vector.broadcast %cst_15 : f32 to vector<8x96xf32>
    %71 = arith.addf %70, %69 : vector<8x96xf32>
    %72 = arith.divf %70, %71 : vector<8x96xf32>
    %73 = vector.extract_strided_slice %66 {offsets = [0, 96], sizes = [8, 32], strides = [1, 1]} : vector<8x128xf32> to vector<8x32xf32>
    %74 = math.tanh %73 : vector<8x32xf32>
    %75 = vector.extract_strided_slice %72 {offsets = [0, 0], sizes = [8, 32], strides = [1, 1]} : vector<8x96xf32> to vector<8x32xf32>
    %76 = vector.extract_strided_slice %72 {offsets = [0, 32], sizes = [8, 32], strides = [1, 1]} : vector<8x96xf32> to vector<8x32xf32>
    %77 = vector.extract_strided_slice %72 {offsets = [0, 64], sizes = [8, 32], strides = [1, 1]} : vector<8x96xf32> to vector<8x32xf32>
    %78 = arith.mulf %76, %58 : vector<8x32xf32>
    %79 = arith.mulf %75, %74 : vector<8x32xf32>
    %80 = arith.addf %78, %79 : vector<8x32xf32>
    %81 = math.tanh %80 : vector<8x32xf32>
    %82 = arith.mulf %77, %81 : vector<8x32xf32>
    %c4 = arith.constant 4 : index
    %c0_16 = arith.constant 0 : index
    %c0_17 = arith.constant 0 : index
    %83 = vector.load %arg1[%c4, %c0_16, %c0_17] : memref<8x8x128xbf16, #tpu.memory_space<vmem>>, vector<1x8x128xbf16>
    %84 = vector.shape_cast %83 : vector<1x8x128xbf16> to vector<8x128xbf16>
    %85 = arith.extf %84 : vector<8x128xbf16> to vector<8x128xf32>
    %86 = arith.truncf %82 : vector<8x32xf32> to vector<8x32xbf16>
    %cst_18 = arith.constant dense<0.000000e+00> : vector<8x128xf32>
    %87 = tpu.matmul %86, %0, %cst_18 {dimension_numbers = #tpu.dot_dimension_numbers<[1], [0], [0], [1], [0, 0, 1, 1], [], []>} : vector<8x32xbf16>, vector<32x128xbf16>, vector<8x128xf32> -> vector<8x128xf32>
    %88 = arith.addf %85, %87 : vector<8x128xf32>
    %89 = vector.extract_strided_slice %88 {offsets = [0, 0], sizes = [8, 96], strides = [1, 1]} : vector<8x128xf32> to vector<8x96xf32>
    %90 = arith.negf %89 : vector<8x96xf32>
    %91 = math.exp %90 : vector<8x96xf32>
    %cst_19 = arith.constant 1.000000e+00 : f32
    %92 = vector.broadcast %cst_19 : f32 to vector<8x96xf32>
    %93 = arith.addf %92, %91 : vector<8x96xf32>
    %94 = arith.divf %92, %93 : vector<8x96xf32>
    %95 = vector.extract_strided_slice %88 {offsets = [0, 96], sizes = [8, 32], strides = [1, 1]} : vector<8x128xf32> to vector<8x32xf32>
    %96 = math.tanh %95 : vector<8x32xf32>
    %97 = vector.extract_strided_slice %94 {offsets = [0, 0], sizes = [8, 32], strides = [1, 1]} : vector<8x96xf32> to vector<8x32xf32>
    %98 = vector.extract_strided_slice %94 {offsets = [0, 32], sizes = [8, 32], strides = [1, 1]} : vector<8x96xf32> to vector<8x32xf32>
    %99 = vector.extract_strided_slice %94 {offsets = [0, 64], sizes = [8, 32], strides = [1, 1]} : vector<8x96xf32> to vector<8x32xf32>
    %100 = arith.mulf %98, %80 : vector<8x32xf32>
    %101 = arith.mulf %97, %96 : vector<8x32xf32>
    %102 = arith.addf %100, %101 : vector<8x32xf32>
    %103 = math.tanh %102 : vector<8x32xf32>
    %104 = arith.mulf %99, %103 : vector<8x32xf32>
    %c5 = arith.constant 5 : index
    %c0_20 = arith.constant 0 : index
    %c0_21 = arith.constant 0 : index
    %105 = vector.load %arg1[%c5, %c0_20, %c0_21] : memref<8x8x128xbf16, #tpu.memory_space<vmem>>, vector<1x8x128xbf16>
    %106 = vector.shape_cast %105 : vector<1x8x128xbf16> to vector<8x128xbf16>
    %107 = arith.extf %106 : vector<8x128xbf16> to vector<8x128xf32>
    %108 = arith.truncf %104 : vector<8x32xf32> to vector<8x32xbf16>
    %cst_22 = arith.constant dense<0.000000e+00> : vector<8x128xf32>
    %109 = tpu.matmul %108, %0, %cst_22 {dimension_numbers = #tpu.dot_dimension_numbers<[1], [0], [0], [1], [0, 0, 1, 1], [], []>} : vector<8x32xbf16>, vector<32x128xbf16>, vector<8x128xf32> -> vector<8x128xf32>
    %110 = arith.addf %107, %109 : vector<8x128xf32>
    %111 = vector.extract_strided_slice %110 {offsets = [0, 0], sizes = [8, 96], strides = [1, 1]} : vector<8x128xf32> to vector<8x96xf32>
    %112 = arith.negf %111 : vector<8x96xf32>
    %113 = math.exp %112 : vector<8x96xf32>
    %cst_23 = arith.constant 1.000000e+00 : f32
    %114 = vector.broadcast %cst_23 : f32 to vector<8x96xf32>
    %115 = arith.addf %114, %113 : vector<8x96xf32>
    %116 = arith.divf %114, %115 : vector<8x96xf32>
    %117 = vector.extract_strided_slice %110 {offsets = [0, 96], sizes = [8, 32], strides = [1, 1]} : vector<8x128xf32> to vector<8x32xf32>
    %118 = math.tanh %117 : vector<8x32xf32>
    %119 = vector.extract_strided_slice %116 {offsets = [0, 0], sizes = [8, 32], strides = [1, 1]} : vector<8x96xf32> to vector<8x32xf32>
    %120 = vector.extract_strided_slice %116 {offsets = [0, 32], sizes = [8, 32], strides = [1, 1]} : vector<8x96xf32> to vector<8x32xf32>
    %121 = vector.extract_strided_slice %116 {offsets = [0, 64], sizes = [8, 32], strides = [1, 1]} : vector<8x96xf32> to vector<8x32xf32>
    %122 = arith.mulf %120, %102 : vector<8x32xf32>
    %123 = arith.mulf %119, %118 : vector<8x32xf32>
    %124 = arith.addf %122, %123 : vector<8x32xf32>
    %125 = math.tanh %124 : vector<8x32xf32>
    %126 = arith.mulf %121, %125 : vector<8x32xf32>
    %c6 = arith.constant 6 : index
    %c0_24 = arith.constant 0 : index
    %c0_25 = arith.constant 0 : index
    %127 = vector.load %arg1[%c6, %c0_24, %c0_25] : memref<8x8x128xbf16, #tpu.memory_space<vmem>>, vector<1x8x128xbf16>
    %128 = vector.shape_cast %127 : vector<1x8x128xbf16> to vector<8x128xbf16>
    %129 = arith.extf %128 : vector<8x128xbf16> to vector<8x128xf32>
    %130 = arith.truncf %126 : vector<8x32xf32> to vector<8x32xbf16>
    %cst_26 = arith.constant dense<0.000000e+00> : vector<8x128xf32>
    %131 = tpu.matmul %130, %0, %cst_26 {dimension_numbers = #tpu.dot_dimension_numbers<[1], [0], [0], [1], [0, 0, 1, 1], [], []>} : vector<8x32xbf16>, vector<32x128xbf16>, vector<8x128xf32> -> vector<8x128xf32>
    %132 = arith.addf %129, %131 : vector<8x128xf32>
    %133 = vector.extract_strided_slice %132 {offsets = [0, 0], sizes = [8, 96], strides = [1, 1]} : vector<8x128xf32> to vector<8x96xf32>
    %134 = arith.negf %133 : vector<8x96xf32>
    %135 = math.exp %134 : vector<8x96xf32>
    %cst_27 = arith.constant 1.000000e+00 : f32
    %136 = vector.broadcast %cst_27 : f32 to vector<8x96xf32>
    %137 = arith.addf %136, %135 : vector<8x96xf32>
    %138 = arith.divf %136, %137 : vector<8x96xf32>
    %139 = vector.extract_strided_slice %132 {offsets = [0, 96], sizes = [8, 32], strides = [1, 1]} : vector<8x128xf32> to vector<8x32xf32>
    %140 = math.tanh %139 : vector<8x32xf32>
    %141 = vector.extract_strided_slice %138 {offsets = [0, 0], sizes = [8, 32], strides = [1, 1]} : vector<8x96xf32> to vector<8x32xf32>
    %142 = vector.extract_strided_slice %138 {offsets = [0, 32], sizes = [8, 32], strides = [1, 1]} : vector<8x96xf32> to vector<8x32xf32>
    %143 = vector.extract_strided_slice %138 {offsets = [0, 64], sizes = [8, 32], strides = [1, 1]} : vector<8x96xf32> to vector<8x32xf32>
    %144 = arith.mulf %142, %124 : vector<8x32xf32>
    %145 = arith.mulf %141, %140 : vector<8x32xf32>
    %146 = arith.addf %144, %145 : vector<8x32xf32>
    %147 = math.tanh %146 : vector<8x32xf32>
    %148 = arith.mulf %143, %147 : vector<8x32xf32>
    %c7 = arith.constant 7 : index
    %c0_28 = arith.constant 0 : index
    %c0_29 = arith.constant 0 : index
    %149 = vector.load %arg1[%c7, %c0_28, %c0_29] : memref<8x8x128xbf16, #tpu.memory_space<vmem>>, vector<1x8x128xbf16>
    %150 = vector.shape_cast %149 : vector<1x8x128xbf16> to vector<8x128xbf16>
    %151 = arith.extf %150 : vector<8x128xbf16> to vector<8x128xf32>
    %152 = arith.truncf %148 : vector<8x32xf32> to vector<8x32xbf16>
    %cst_30 = arith.constant dense<0.000000e+00> : vector<8x128xf32>
    %153 = tpu.matmul %152, %0, %cst_30 {dimension_numbers = #tpu.dot_dimension_numbers<[1], [0], [0], [1], [0, 0, 1, 1], [], []>} : vector<8x32xbf16>, vector<32x128xbf16>, vector<8x128xf32> -> vector<8x128xf32>
    %154 = arith.addf %151, %153 : vector<8x128xf32>
    %155 = vector.extract_strided_slice %154 {offsets = [0, 0], sizes = [8, 96], strides = [1, 1]} : vector<8x128xf32> to vector<8x96xf32>
    %156 = arith.negf %155 : vector<8x96xf32>
    %157 = math.exp %156 : vector<8x96xf32>
    %cst_31 = arith.constant 1.000000e+00 : f32
    %158 = vector.broadcast %cst_31 : f32 to vector<8x96xf32>
    %159 = arith.addf %158, %157 : vector<8x96xf32>
    %160 = arith.divf %158, %159 : vector<8x96xf32>
    %161 = vector.extract_strided_slice %154 {offsets = [0, 96], sizes = [8, 32], strides = [1, 1]} : vector<8x128xf32> to vector<8x32xf32>
    %162 = math.tanh %161 : vector<8x32xf32>
    %163 = vector.extract_strided_slice %160 {offsets = [0, 0], sizes = [8, 32], strides = [1, 1]} : vector<8x96xf32> to vector<8x32xf32>
    %164 = vector.extract_strided_slice %160 {offsets = [0, 32], sizes = [8, 32], strides = [1, 1]} : vector<8x96xf32> to vector<8x32xf32>
    %165 = vector.extract_strided_slice %160 {offsets = [0, 64], sizes = [8, 32], strides = [1, 1]} : vector<8x96xf32> to vector<8x32xf32>
    %166 = arith.mulf %164, %146 : vector<8x32xf32>
    %167 = arith.mulf %163, %162 : vector<8x32xf32>
    %168 = arith.addf %166, %167 : vector<8x32xf32>
    %169 = math.tanh %168 : vector<8x32xf32>
    %170 = arith.mulf %165, %169 : vector<8x32xf32>
    %c0_32 = arith.constant 0 : index
    %c0_33 = arith.constant 0 : index
    %171 = vector.load %arg2[%c0_32, %c0_33] : memref<8x128xbf16, #tpu.memory_space<vmem>>, vector<8x128xbf16>
    %172 = arith.extf %171 : vector<8x128xbf16> to vector<8x128xf32>
    %173 = vector.extract_strided_slice %172 {offsets = [0, 0], sizes = [8, 96], strides = [1, 1]} : vector<8x128xf32> to vector<8x96xf32>
    %174 = arith.negf %173 : vector<8x96xf32>
    %175 = math.exp %174 : vector<8x96xf32>
    %cst_34 = arith.constant 1.000000e+00 : f32
    %176 = vector.broadcast %cst_34 : f32 to vector<8x96xf32>
    %177 = arith.addf %176, %175 : vector<8x96xf32>
    %178 = arith.divf %176, %177 : vector<8x96xf32>
    %179 = vector.extract_strided_slice %172 {offsets = [0, 96], sizes = [8, 32], strides = [1, 1]} : vector<8x128xf32> to vector<8x32xf32>
    %180 = math.tanh %179 : vector<8x32xf32>
    %181 = vector.extract_strided_slice %178 {offsets = [0, 0], sizes = [8, 32], strides = [1, 1]} : vector<8x96xf32> to vector<8x32xf32>
    %182 = vector.extract_strided_slice %178 {offsets = [0, 64], sizes = [8, 32], strides = [1, 1]} : vector<8x96xf32> to vector<8x32xf32>
    %183 = arith.mulf %181, %180 : vector<8x32xf32>
    %184 = math.tanh %183 : vector<8x32xf32>
    %185 = arith.mulf %182, %184 : vector<8x32xf32>
    %186 = tpu.concatenate %170, %185 in 1 : vector<8x32xf32>, vector<8x32xf32> -> vector<8x64xf32>
    %187 = arith.truncf %186 : vector<8x64xf32> to vector<8x64xbf16>
    %c0_35 = arith.constant 0 : index
    %c0_36 = arith.constant 0 : index
    %188 = vector.load %arg4[%c0_35, %c0_36] : memref<64x160xbf16, #tpu.memory_space<vmem>>, vector<64x160xbf16>
    %cst_37 = arith.constant dense<0.000000e+00> : vector<8x160xf32>
    %189 = tpu.matmul %187, %188, %cst_37 {dimension_numbers = #tpu.dot_dimension_numbers<[1], [0], [0], [1], [0, 0, 1, 1], [], []>} : vector<8x64xbf16>, vector<64x160xbf16>, vector<8x160xf32> -> vector<8x160xf32>
    %c0_38 = arith.constant 0 : index
    %c0_39 = arith.constant 0 : index
    %190 = vector.load %arg5[%c0_38, %c0_39] : memref<1x160xf32, #tpu.memory_space<vmem>>, vector<1x160xf32>
    %191 = vector.broadcast %190 : vector<1x160xf32> to vector<8x160xf32>
    %192 = arith.addf %189, %191 : vector<8x160xf32>
    %193 = arith.truncf %192 : vector<8x160xf32> to vector<8x160xbf16>
    %c0_40 = arith.constant 0 : index
    %c0_41 = arith.constant 0 : index
    %194 = vector.load %arg6[%c0_40, %c0_41] : memref<160x128xbf16, #tpu.memory_space<vmem>>, vector<160x128xbf16>
    %cst_42 = arith.constant dense<0.000000e+00> : vector<8x128xf32>
    %195 = tpu.matmul %193, %194, %cst_42 {dimension_numbers = #tpu.dot_dimension_numbers<[1], [0], [0], [1], [0, 0, 1, 1], [], []>} : vector<8x160xbf16>, vector<160x128xbf16>, vector<8x128xf32> -> vector<8x128xf32>
    %c0_43 = arith.constant 0 : index
    %c0_44 = arith.constant 0 : index
    %196 = vector.load %arg7[%c0_43, %c0_44] : memref<1x128xf32, #tpu.memory_space<vmem>>, vector<1x128xf32>
    %197 = vector.broadcast %196 : vector<1x128xf32> to vector<8x128xf32>
    %198 = arith.addf %195, %197 : vector<8x128xf32>
    %199 = arith.negf %198 : vector<8x128xf32>
    %200 = math.exp %199 : vector<8x128xf32>
    %cst_45 = arith.constant 1.000000e+00 : f32
    %201 = vector.broadcast %cst_45 : f32 to vector<8x128xf32>
    %202 = arith.addf %201, %200 : vector<8x128xf32>
    %203 = arith.divf %201, %202 : vector<8x128xf32>
    %c0_46 = arith.constant 0 : index
    %c0_47 = arith.constant 0 : index
    %204 = vector.load %arg8[%c0_46, %c0_47] : memref<8x128xf32, #tpu.memory_space<vmem>>, vector<8x128xf32>
    tpu.vector_store %arg8[%c0_46, %c0_47], %203 {strides = array<i32>} : memref<8x128xf32, #tpu.memory_space<vmem>>, vector<8x128xf32>,
    return
  }
  func.func @transform_0(%arg0: i32) -> (i32, i32, i32) {
    %c0_i32 = arith.constant 0 : i32
    %c0_i32_0 = arith.constant 0 : i32
    %c0_i32_1 = arith.constant 0 : i32
    return %c0_i32, %arg0, %c0_i32_0 : i32, i32, i32
  }
  func.func @transform_1(%arg0: i32) -> (i32, i32) {
    %c0_i32 = arith.constant 0 : i32
    %c0_i32_0 = arith.constant 0 : i32
    return %arg0, %c0_i32 : i32, i32
  }
  func.func @transform_2(%arg0: i32) -> (i32, i32) {
    %c0_i32 = arith.constant 0 : i32
    %c0_i32_0 = arith.constant 0 : i32
    %c0_i32_1 = arith.constant 0 : i32
    return %c0_i32, %c0_i32_0 : i32, i32
  }
  func.func @transform_3(%arg0: i32) -> (i32, i32) {
    %c0_i32 = arith.constant 0 : i32
    %c0_i32_0 = arith.constant 0 : i32
    %c0_i32_1 = arith.constant 0 : i32
    return %c0_i32, %c0_i32_0 : i32, i32
  }
  func.func @transform_4(%arg0: i32) -> (i32, i32) {
    %c0_i32 = arith.constant 0 : i32
    %c0_i32_0 = arith.constant 0 : i32
    %c0_i32_1 = arith.constant 0 : i32
    return %c0_i32, %c0_i32_0 : i32, i32
  }
  func.func @transform_5(%arg0: i32) -> (i32, i32) {
    %c0_i32 = arith.constant 0 : i32
    %c0_i32_0 = arith.constant 0 : i32
    %c0_i32_1 = arith.constant 0 : i32
    return %c0_i32, %c0_i32_0 : i32, i32
  }
  func.func @transform_6(%arg0: i32) -> (i32, i32) {
    %c0_i32 = arith.constant 0 : i32
    %c0_i32_0 = arith.constant 0 : i32
    %c0_i32_1 = arith.constant 0 : i32
    return %c0_i32, %c0_i32_0 : i32, i32
  }
  func.func @transform_7(%arg0: i32) -> (i32, i32) {
    %c0_i32 = arith.constant 0 : i32
    %c0_i32_0 = arith.constant 0 : i32
    return %arg0, %c0_i32 : i32, i32
  }
}

</mosaic_0001>

<bundles_post_ra>
// kernel: tpu_custom_call.1
= control target key start
LH: loop header
LB: loop body
LE: loop exit
PB: predicated region body
PF: predicated region fallthrough
CT: control target
= control target key end

     0   :  { %12 = vsyncpa [#allocation3], 0  ;;  %s1485_s0 = inlined_call_operand.hbm [shape: bf16[8,8,128], index: 0, kind: input, shape index: {}]   ;;  %s1486_s1 = inlined_call_operand.hbm [shape: bf16[8,128], index: 1, kind: input, shape index: {}]   ;;  %s1487_s2 = inlined_call_operand.hbm [shape: bf16[32,128], index: 2, kind: input, shape index: {}]   ;;  %s1488_s3 = inlined_call_operand.hbm [shape: bf16[64,160], index: 3, kind: input, shape index: {}]   ;;  %s1489_s4 = inlined_call_operand.vmem [shape: f32[1,160], index: 4, kind: input, shape index: {}]   ;;  %s1490_s5 = inlined_call_operand.hbm [shape: bf16[160,128], index: 5, kind: input, shape index: {}]   ;;  %s1491_s6 = inlined_call_operand.vmem [shape: f32[1,128], index: 6, kind: input, shape index: {}]   ;;  %s1492_s7 = inlined_call_operand.hbm [shape: f32[8,128], index: 7, kind: output, shape index: {}]  }
   0x1   :  { %13 = vsyncpa [#allocation6], 0 }
   0x2   :  { %14 = vsyncpa [#allocation9], 0 }
   0x3   :  { %15 = vsyncpa [#allocation4], 0  ;;  %s1311_s24 = smov [#allocation5]   ;;  %s1312_s26 = smov [#allocation8]  }
   0x4   :  { %s34_s25 = sshll.u32 %s1311_s24, 4  ;;  %s55_s27 = sshll.u32 %s1312_s26, 4  ;;  %s35_s25 = int_to_ptr.vmem [resolvable:$true] %s34_s25  ;;  %s56_s27 = int_to_ptr.vmem [resolvable:$true] %s55_s27 }
   0x5   :  { %s1191_s28 = scalar_lea.vmem %s35_s25, 64  ;;  %p1196_p1 = scmp.lt.s32.totalorder %s35_s25, %s35_s25 }
   0x6   :  { %p1192_p0 = scmp.ne.s32.totalorder %s35_s25, %s1191_s28  ;;  %p1197_p2 = scmp.lt.s32.totalorder %s1191_s28, %s1191_s28 }
   0x8   :  { %p1198_p3 = por %p1197_p2, %p1196_p1 }
   0xa   :  { %p1199_p4 = pnand %p1198_p3, %p1192_p0 }
   0xc   :  { %1202 = shalt.err (!%p1199_p4)
}
   0xd   :  { %37 = dma.hbm_to_vmem [thread:$0]  %s1486_s1, 64, %s35_s25, [#allocation6]  }
   0xe   :  { %s1211_s8 = scalar_lea.vmem %s56_s27, 1024  ;;  %p1216_p6 = scmp.lt.s32.totalorder %s56_s27, %s56_s27 }
   0xf   :  { %p1212_p5 = scmp.ne.s32.totalorder %s56_s27, %s1211_s8  ;;  %p1217_p7 = scmp.lt.s32.totalorder %s1211_s8, %s1211_s8 }
  0x11   :  { %p1218_p8 = por %p1217_p7, %p1216_p6 }
  0x13   :  { %p1219_p9 = pnand %p1218_p8, %p1212_p5 }
  0x15   :  { %1222 = shalt.err (!%p1219_p9)
}
  0x16   :  { %s1313_s9 = smov 128   ;;  %s1314_s10 = smov 8  }
  0x17   :  { %61 = dma.hbm_to_vmem [thread:$0]  %s1488_s3, 1024, %s56_s27, [#allocation9], %s1313_s9, %s1313_s9, %s1314_s10  }
  0x18   :  { %s1315_s13 = smov [#allocation2]  }
  0x19   :  { %s21_s14 = sshll.u32 %s1315_s13, 4  ;;  %s22_s14 = int_to_ptr.vmem [resolvable:$true] %s21_s14 }
  0x1a   :  { %s1231_s15 = scalar_lea.vmem %s22_s14, 512  ;;  %p1236_p11 = scmp.lt.s32.totalorder %s22_s14, %s22_s14 }
  0x1b   :  { %p1232_p10 = scmp.ne.s32.totalorder %s22_s14, %s1231_s15  ;;  %p1237_p12 = scmp.lt.s32.totalorder %s1231_s15, %s1231_s15 }
  0x1d   :  { %p1238_p13 = por %p1237_p12, %p1236_p11 }
  0x1f   :  { %p1239_p0 = pnand %p1238_p13, %p1232_p10 }
  0x21   :  { %1242 = shalt.err (!%p1239_p0)
}
  0x22   :  { %s1316_s1 = smov 64   ;;  %s1317_s16 = smov 4  }
  0x23   :  { %27 = dma.hbm_to_vmem [thread:$0]  %s1485_s0, 512, %s22_s14, [#allocation3], %s1316_s1, %s1316_s1, %s1317_s16  }
  0x24   :  { %s1318_s19 = smov [#allocation7]   ;;  %s1319_s20 = smov [#allocation10]  }
  0x25   :  { %s43_s3 = sshll.u32 %s1318_s19, 4  ;;  %s69_s21 = sshll.u32 %s1319_s20, 4  ;;  %s44_s3 = int_to_ptr.vmem [resolvable:$true] %s43_s3  ;;  %s70_s21 = int_to_ptr.vmem [resolvable:$true] %s69_s21 }
  0x26   :  { %s1251_s22 = scalar_lea.vmem %s44_s3, 256  ;;  %p1256_p2 = scmp.lt.s32.totalorder %s44_s3, %s44_s3 }
  0x27   :  { %p1252_p1 = scmp.ne.s32.totalorder %s44_s3, %s1251_s22  ;;  %p1257_p3 = scmp.lt.s32.totalorder %s1251_s22, %s1251_s22 }
  0x29   :  { %p1258_p4 = por %p1257_p3, %p1256_p2 }
  0x2b   :  { %p1259_p5 = pnand %p1258_p4, %p1252_p1 }
  0x2d   :  { %1262 = shalt.err (!%p1259_p5)
}
  0x2e   :  { %49 = dma.hbm_to_vmem [thread:$0]  %s1487_s2, 256, %s44_s3, [#allocation6], %s1316_s1, %s1316_s1, %s1317_s16  }
  0x2f   :  { %s1271_s0 = scalar_lea.vmem %s70_s21, 1280  ;;  %p1276_p7 = scmp.lt.s32.totalorder %s70_s21, %s70_s21 }
  0x30   :  { %p1272_p6 = scmp.ne.s32.totalorder %s70_s21, %s1271_s0  ;;  %p1277_p8 = scmp.lt.s32.totalorder %s1271_s0, %s1271_s0 }
  0x32   :  { %p1278_p9 = por %p1277_p8, %p1276_p7 }
  0x34   :  { %p1279_p10 = pnand %p1278_p9, %p1272_p6 }
  0x36   :  { %1282 = shalt.err (!%p1279_p10)
}
  0x37   :  { %75 = dma.hbm_to_vmem [thread:$0]  %s1490_s5, 1280, %s70_s21, [#allocation9], %s1316_s1, %s1316_s1, %s1317_s16  }
  0x38   :  { %1303 = dma.done.wait [#allocation3], 512  }
  0x39   :  { %1304 = vsyncadd [#allocation3], 4294966784 }
  0x3a   :  { %1305 = dma.done.wait [#allocation6], 320  }
  0x3b   :  { %1306 = vsyncadd [#allocation6], 4294966976 }
  0x3c   :  { %1307 = dma.done.wait [#allocation9], 2304  }
  0x3d   :  { %1308 = vsyncadd [#allocation9], 4294964992  ;;  %v98_v0 = vld [vmem:[#allocation2] sm:$0xff]   ;;  %s1320_s2 = smov 32   ;;  %v1388_v9 = vld [vmem:[#allocation7 + $0x8] sm:$0xff]   ;;  %v1321_v10 = vmov 0.0  }
  0x3e   :  { %v99_v1 = vunpack.c.l.bf16 %v98_v0  ;;  %1012 = vmatprep.subr.bf16.mxu1 %v1321_v10  ;;  %vm1322_vm0 = vmmov 0   ;;  %v1394_v11 = vld [vmem:[#allocation7] sm:$0xff]   ;;  %1044 = vmatprep.subr.bf16.mxu0 %v1321_v10  ;;  %vm137_vm1 = vcmask 261120   ;;  %v120_v17 = vunpack.c.h.bf16 %v98_v0  ;;  %s1323_s5 = smov 96  }
  0x3f   :  { %1016 = vmatprep.mubr.msk.bf16.mxu1 %vm1322_vm0, %v1321_v10  ;;  %1013 = vmatpush3.bf16.msra.mxu1 %v1388_v9  ;;  %v211_v39 = vld [vmem:[#allocation2 + $0x8] sm:$0xff]   ;;  %vm750_vm2 = vcmask 523264  }
  0x40   :  { %1107 = vtanh.f32 %v99_v1  ;;  %v951_v3 = vmul.f32 -1.442695, %v99_v1  ;;  %1014 = vmatprep.subr.bf16.mxu1 %v1321_v10  ;;  %1045 = vmatpush3.bf16.msra.mxu0 %v1388_v9  ;;  %v212_v40 = vunpack.c.l.bf16 %v211_v39  ;;  %v287_v61 = vunpack.c.h.bf16 %v211_v39 }
  0x41   :  { %1046 = vmatprep.subr.bf16.mxu0 %v1321_v10  ;;  %1048 = vmatprep.mubr.msk.bf16.mxu0 %vm1322_vm0, %v1321_v10 }
  0x42   :  { %1109 = vpow2.f32 %v951_v3 }
  0x43   :  { %1015 = vmatpush3.bf16.msra.mxu1 %v1394_v11 }
  0x44   :  { %1020 = vmatprep.subr.bf16.mxu1 %v1321_v10  ;;  %1047 = vmatpush3.bf16.msra.mxu0 %v1394_v11 }
  0x45   :  { %1060 = vmatprep.subr.bf16.mxu0 %v1321_v10 }
  0x4d   :  { %v1108_v2 = vpop.eup %1107 }
  0x4e   :  { %108 = vrot.lane.b32.xlu0 %v1108_v2, %s1320_s2 }
  0x4f   :  { %v1110_v4 = vpop.eup %1109 }
  0x50   :  { %v103_v5 = vadd.f32 1.0, %v1110_v4 }
  0x52   :  { %1111 = vrcp.f32 %v103_v5 }
  0x5f   :  { %v1112_v6 = vpop.eup %1111 }
  0xc0   :  { %v109_v7 = vpop.permute.xlu0 %108 }
  0xc1   :  { %v111_v8 = vmul.f32 %v1112_v6, %v109_v7 }
  0xc3   :  { %1113 = vtanh.f32 %v111_v8 }
  0xd0   :  { %v1114_v12 = vpop.eup %1113 }
  0xd1   :  { %114 = vrot.lane.b32.xlu0 %v1114_v12, %s1316_s1 }
  0xd5   :  { %190 = vrot.lane.b32.xlu0 %v111_v8, %s1320_s2 }
 0x143   :  { %v115_v13 = vpop.permute.xlu0 %114 }
 0x144   :  { %v117_v14 = vmul.f32 %v1112_v6, %v115_v13 }
 0x146   :  { %v121_v15 = vpack.c.bf16 %v117_v14, %v117_v14 }
 0x147   :  { %v191_v30 = vpop.permute.xlu0 %190 }
 0x148   :  { %123 = vrot.lane.b32.xlu1 %v121_v15, %s1316_s1 }
 0x1ba   :  { %v124_v16 = vpop.permute.xlu1 %123 }
 0x1bb   :  { %1017 = vmatmul.mubr.msk.bf16.vlgmr.msra.gmra.mxu1 %vm137_vm1, %v124_v16 }
 0x1bc   :  { %1021 = vmatpush3.bf16.msra.mxu1 %v1388_v9  ;;  %1024 = vmatprep.mubr.msk.bf16.mxu1 %vm1322_vm0, %v1321_v10 }
 0x1bd   :  { %1022 = vmatprep.subr.bf16.mxu1 %v1321_v10 }
 0x1c0   :  { %1023 = vmatpush3.bf16.msra.mxu1 %v1394_v11 }
 0x1c1   :  { %1028 = vmatprep.subr.bf16.mxu1 %v1321_v10 }
 0x27b   :  { %v175_v18 = vpop.f32.mrf.mxu1 }
 0x27c   :  { %v181_v19 = vadd.f32 %v175_v18, %v120_v17 }
 0x27d   :  { %v1018_v20 = vpop.f32.mrf.mxu1 }
 0x27e   :  { %1115 = vtanh.f32 %v181_v19  ;;  %v955_v24 = vmul.f32 -1.442695, %v181_v19 }
 0x27f   :  { %v178_v21 = vpop.f32.mrf.mxu1 }
 0x280   :  { %1117 = vpow2.f32 %v955_v24  ;;  %v361_v21 = vld [vmem:[#allocation2 + $0x10] sm:$0xff]  }
 0x281   :  { %v1019_v22 = vpop.f32.mrf.mxu1 }
 0x282   :  { %v362_v22 = vunpack.c.l.bf16 %v361_v21 }
 0x28b   :  { %v1116_v23 = vpop.eup %1115 }
 0x28c   :  { %195 = vrot.lane.b32.xlu1 %v1116_v23, %s1320_s2 }
 0x28d   :  { %v1118_v25 = vpop.eup %1117 }
 0x28e   :  { %v185_v26 = vadd.f32 1.0, %v1118_v25 }
 0x290   :  { %1119 = vrcp.f32 %v185_v26 }
 0x29d   :  { %v1120_v27 = vpop.eup %1119 }
 0x29e   :  { %v193_v31 = vmul.f32 %v1120_v27, %v191_v30 }
 0x2fe   :  { %v196_v28 = vpop.permute.xlu1 %195 }
 0x2ff   :  { %v198_v29 = vmul.f32 %v1120_v27, %v196_v28 }
 0x301   :  { %200 = vrot.lane.b32.xlu1 %v198_v29, %s1320_s2 }
 0x373   :  { %v201_v32 = vpop.permute.xlu1 %200 }
 0x374   :  { %v203_v33 = vadd.f32 %v201_v32, %v193_v31 }
 0x376   :  { %1121 = vtanh.f32 %v203_v33 }
 0x383   :  { %v1122_v34 = vpop.eup %1121 }
 0x384   :  { %206 = vrot.lane.b32.xlu0 %v1122_v34, %s1320_s2 }
 0x3f6   :  { %v207_v35 = vpop.permute.xlu0 %206 }
 0x3f7   :  { %v209_v36 = vmul.f32 %v1120_v27, %v207_v35 }
 0x3f9   :  { %v213_v37 = vpack.c.bf16 %v209_v36, %v209_v36 }
 0x3fb   :  { %215 = vrot.lane.b32.xlu1 %v213_v37, %s1316_s1 }
 0x46d   :  { %v216_v38 = vpop.permute.xlu1 %215 }
 0x46e   :  { %1025 = vmatmul.mubr.msk.bf16.vlgmr.msra.gmra.mxu1 %vm137_vm1, %v216_v38 }
 0x46f   :  { %1029 = vmatpush3.bf16.msra.mxu1 %v1388_v9  ;;  %1032 = vmatprep.mubr.msk.bf16.mxu1 %vm1322_vm0, %v1321_v10 }
 0x470   :  { %1030 = vmatprep.subr.bf16.mxu1 %v1321_v10 }
 0x473   :  { %1031 = vmatpush3.bf16.msra.mxu1 %v1394_v11 }
 0x474   :  { %1036 = vmatprep.subr.bf16.mxu1 %v1321_v10 }
 0x52e   :  { %v254_v41 = vpop.f32.mrf.mxu1 }
 0x52f   :  { %v260_v42 = vadd.f32 %v254_v41, %v212_v40 }
 0x530   :  { %v1026_v43 = vpop.f32.mrf.mxu1 }
 0x531   :  { %1123 = vtanh.f32 %v260_v42  ;;  %v957_v47 = vmul.f32 -1.442695, %v260_v42  ;;  %v437_v43 = vunpack.c.h.bf16 %v361_v21 }
 0x532   :  { %v257_v44 = vpop.f32.mrf.mxu1 }
 0x533   :  { %1125 = vpow2.f32 %v957_v47 }
 0x534   :  { %v1027_v45 = vpop.f32.mrf.mxu1 }
 0x53e   :  { %v1124_v46 = vpop.eup %1123 }
 0x53f   :  { %270 = vrot.lane.b32.xlu0 %v1124_v46, %s1320_s2 }
 0x540   :  { %v1126_v48 = vpop.eup %1125 }
 0x541   :  { %v264_v49 = vadd.f32 1.0, %v1126_v48 }
 0x543   :  { %1127 = vrcp.f32 %v264_v49 }
 0x550   :  { %v1128_v50 = vpop.eup %1127 }
 0x551   :  { %v268_v53 = vmul.f32 %v1128_v50, %v203_v33 }
 0x5b1   :  { %v271_v51 = vpop.permute.xlu0 %270 }
 0x5b2   :  { %v273_v52 = vmul.f32 %v1128_v50, %v271_v51 }
 0x5b4   :  { %275 = vrot.lane.b32.xlu1 %v273_v52, %s1320_s2 }
 0x626   :  { %v276_v54 = vpop.permute.xlu1 %275 }
 0x627   :  { %v278_v55 = vadd.f32 %v276_v54, %v268_v53 }
 0x629   :  { %1129 = vtanh.f32 %v278_v55 }
 0x636   :  { %v1130_v56 = vpop.eup %1129 }
 0x637   :  { %281 = vrot.lane.b32.xlu0 %v1130_v56, %s1320_s2 }
 0x6a9   :  { %v282_v57 = vpop.permute.xlu0 %281 }
 0x6aa   :  { %v284_v58 = vmul.f32 %v1128_v50, %v282_v57 }
 0x6ac   :  { %v288_v59 = vpack.c.bf16 %v284_v58, %v284_v58 }
 0x6ae   :  { %290 = vrot.lane.b32.xlu1 %v288_v59, %s1316_s1 }
 0x720   :  { %v291_v60 = vpop.permute.xlu1 %290 }
 0x721   :  { %1033 = vmatmul.mubr.msk.bf16.vlgmr.msra.gmra.mxu1 %vm137_vm1, %v291_v60 }
 0x722   :  { %1037 = vmatpush3.bf16.msra.mxu1 %v1388_v9  ;;  %1040 = vmatprep.mubr.msk.bf16.mxu1 %vm1322_vm0, %v1321_v10 }
 0x723   :  { %1038 = vmatprep.subr.bf16.mxu1 %v1321_v10 }
 0x726   :  { %1039 = vmatpush3.bf16.msra.mxu1 %v1394_v11 }
 0x727   :  { %1052 = vmatprep.subr.bf16.mxu1 %v1321_v10 }
 0x7e1   :  { %v329_v62 = vpop.f32.mrf.mxu1 }
 0x7e2   :  { %v335_v63 = vadd.f32 %v329_v62, %v287_v61  ;;  %v511_v61 = vld [vmem:[#allocation2 + $0x18] sm:$0xff]  }
 0x7e3   :  { %v1034_v0 = vpop.f32.mrf.mxu1  ;;  %v512_v62 = vunpack.c.l.bf16 %v511_v61 }
 0x7e4   :  { %1131 = vtanh.f32 %v335_v63  ;;  %v959_v4 = vmul.f32 -1.442695, %v335_v63 }
 0x7e5   :  { %v332_v1 = vpop.f32.mrf.mxu1 }
 0x7e6   :  { %1133 = vpow2.f32 %v959_v4 }
 0x7e7   :  { %v1035_v2 = vpop.f32.mrf.mxu1 }
 0x7f1   :  { %v1132_v3 = vpop.eup %1131 }
 0x7f2   :  { %345 = vrot.lane.b32.xlu0 %v1132_v3, %s1320_s2 }
 0x7f3   :  { %v1134_v5 = vpop.eup %1133 }
 0x7f4   :  { %v339_v6 = vadd.f32 1.0, %v1134_v5 }
 0x7f6   :  { %1135 = vrcp.f32 %v339_v6 }
 0x803   :  { %v1136_v7 = vpop.eup %1135 }
 0x804   :  { %v343_v13 = vmul.f32 %v1136_v7, %v278_v55 }
 0x864   :  { %v346_v8 = vpop.permute.xlu0 %345 }
 0x865   :  { %v348_v12 = vmul.f32 %v1136_v7, %v346_v8 }
 0x867   :  { %350 = vrot.lane.b32.xlu1 %v348_v12, %s1320_s2 }
 0x8d9   :  { %v351_v14 = vpop.permute.xlu1 %350 }
 0x8da   :  { %v353_v15 = vadd.f32 %v351_v14, %v343_v13 }
 0x8dc   :  { %1137 = vtanh.f32 %v353_v15 }
 0x8e9   :  { %v1138_v16 = vpop.eup %1137 }
 0x8ea   :  { %356 = vrot.lane.b32.xlu0 %v1138_v16, %s1320_s2 }
 0x95c   :  { %v357_v17 = vpop.permute.xlu0 %356 }
 0x95d   :  { %v359_v18 = vmul.f32 %v1136_v7, %v357_v17 }
 0x95f   :  { %v363_v19 = vpack.c.bf16 %v359_v18, %v359_v18 }
 0x961   :  { %365 = vrot.lane.b32.xlu1 %v363_v19, %s1316_s1 }
 0x9d3   :  { %v366_v20 = vpop.permute.xlu1 %365 }
 0x9d4   :  { %1041 = vmatmul.mubr.msk.bf16.vlgmr.msra.gmra.mxu1 %vm137_vm1, %v366_v20 }
 0x9d5   :  { %1053 = vmatpush3.bf16.msra.mxu1 %v1388_v9  ;;  %1056 = vmatprep.mubr.msk.bf16.mxu1 %vm1322_vm0, %v1321_v10 }
 0x9d6   :  { %1054 = vmatprep.subr.bf16.mxu1 %v1321_v10 }
 0x9d9   :  { %1055 = vmatpush3.bf16.msra.mxu1 %v1394_v11 }
 0xa94   :  { %v404_v23 = vpop.f32.mrf.mxu1 }
 0xa95   :  { %v410_v24 = vadd.f32 %v404_v23, %v362_v22  ;;  %v587_v22 = vunpack.c.h.bf16 %v511_v61  ;;  %v660_v23 = vld [vmem:[#allocation5] sm:$0xf] }
 0xa96   :  { %v1042_v25 = vpop.f32.mrf.mxu1 }
 0xa97   :  { %1139 = vtanh.f32 %v410_v24  ;;  %v961_v29 = vmul.f32 -1.442695, %v410_v24 }
 0xa98   :  { %v407_v26 = vpop.f32.mrf.mxu1 }
 0xa99   :  { %1141 = vpow2.f32 %v961_v29  ;;  %v661_v26 = vunpack.c.l.bf16 %v660_v23 }
 0xa9a   :  { %v1043_v27 = vpop.f32.mrf.mxu1 }
 0xaa4   :  { %v1140_v28 = vpop.eup %1139 }
 0xaa5   :  { %420 = vrot.lane.b32.xlu0 %v1140_v28, %s1320_s2 }
 0xaa6   :  { %v1142_v30 = vpop.eup %1141 }
 0xaa7   :  { %v414_v31 = vadd.f32 1.0, %v1142_v30 }
 0xaa9   :  { %1143 = vrcp.f32 %v414_v31 }
 0xab6   :  { %v1144_v32 = vpop.eup %1143 }
 0xab7   :  { %v418_v35 = vmul.f32 %v1144_v32, %v353_v15 }
 0xb17   :  { %v421_v33 = vpop.permute.xlu0 %420 }
 0xb18   :  { %v423_v34 = vmul.f32 %v1144_v32, %v421_v33  ;;  %v968_v33 = vmul.f32 -1.442695, %v661_v26 }
 0xb1a   :  { %425 = vrot.lane.b32.xlu1 %v423_v34, %s1320_s2 }
 0xb8c   :  { %v426_v36 = vpop.permute.xlu1 %425 }
 0xb8d   :  { %v428_v37 = vadd.f32 %v426_v36, %v418_v35 }
 0xb8f   :  { %1145 = vtanh.f32 %v428_v37 }
 0xb9c   :  { %v1146_v38 = vpop.eup %1145 }
 0xb9d   :  { %431 = vrot.lane.b32.xlu0 %v1146_v38, %s1320_s2 }
 0xc0f   :  { %v432_v39 = vpop.permute.xlu0 %431 }
 0xc10   :  { %v434_v40 = vmul.f32 %v1144_v32, %v432_v39 }
 0xc12   :  { %v438_v41 = vpack.c.bf16 %v434_v40, %v434_v40 }
 0xc14   :  { %440 = vrot.lane.b32.xlu1 %v438_v41, %s1316_s1 }
 0xc86   :  { %v441_v42 = vpop.permute.xlu1 %440 }
 0xc87   :  { %1049 = vmatmul.mubr.msk.bf16.vlgmr.msra.gmra.mxu0 %vm137_vm1, %v441_v42 }
 0xc88   :  { %1061 = vmatpush3.bf16.msra.mxu0 %v1388_v9  ;;  %1064 = vmatprep.mubr.msk.bf16.mxu0 %vm1322_vm0, %v1321_v10 }
 0xc89   :  { %1062 = vmatprep.subr.bf16.mxu0 %v1321_v10 }
 0xc8c   :  { %1063 = vmatpush3.bf16.msra.mxu0 %v1394_v11 }
 0xd47   :  { %v479_v44 = vpop.f32.mrf.mxu0 }
 0xd48   :  { %v485_v45 = vadd.f32 %v479_v44, %v437_v43 }
 0xd49   :  { %v1050_v46 = vpop.f32.mrf.mxu0 }
 0xd4a   :  { %1147 = vtanh.f32 %v485_v45  ;;  %v963_v50 = vmul.f32 -1.442695, %v485_v45 }
 0xd4b   :  { %v482_v47 = vpop.f32.mrf.mxu0 }
 0xd4c   :  { %1149 = vpow2.f32 %v963_v50  ;;  %v1090_v50 = vld [vmem:[#allocation8 + $0x24] ss:$8 sps:$4 sm:$0xff]  }
 0xd4d   :  { %v1051_v48 = vpop.f32.mrf.mxu0 }
 0xd4e   :  { %v1085_v48 = vld [vmem:[#allocation8 + $0x30] ss:$8 sps:$4 sm:$0xff]  }
 0xd57   :  { %v1148_v49 = vpop.eup %1147 }
 0xd58   :  { %495 = vrot.lane.b32.xlu0 %v1148_v49, %s1320_s2  ;;  %v1087_v49 = vld [vmem:[#allocation8 + $0x34] ss:$8 sps:$4 sm:$0xff]  }
 0xd59   :  { %v1150_v9 = vpop.eup %1149  ;;  %762 = vmatprep.subr.bf16.mxu1 %v1087_v49 }
 0xd5a   :  { %v489_v51 = vadd.f32 1.0, %v1150_v9  ;;  %v1088_v9 = vld [vmem:[#allocation8 + $0x20] ss:$8 sps:$4 sm:$0xff]  }
 0xd5c   :  { %1151 = vrcp.f32 %v489_v51  ;;  %v1093_v51 = vld [vmem:[#allocation8 + $0x14] ss:$8 sps:$4 sm:$0xff]  }
 0xd69   :  { %v1152_v52 = vpop.eup %1151 }
 0xd6a   :  { %v493_v11 = vmul.f32 %v1152_v52, %v428_v37 }
 0xdca   :  { %v496_v53 = vpop.permute.xlu0 %495 }
 0xdcb   :  { %v498_v10 = vmul.f32 %v1152_v52, %v496_v53  ;;  %v1096_v53 = vld [vmem:[#allocation8 + $0x4] ss:$8 sps:$4 sm:$0xff]  }
 0xdcd   :  { %500 = vrot.lane.b32.xlu1 %v498_v10, %s1320_s2 }
 0xe3f   :  { %v501_v54 = vpop.permute.xlu1 %500 }
 0xe40   :  { %v503_v55 = vadd.f32 %v501_v54, %v493_v11  ;;  %v1094_v11 = vld [vmem:[#allocation8] ss:$8 sps:$4 sm:$0xff]  }
 0xe42   :  { %1153 = vtanh.f32 %v503_v55 }
 0xe4f   :  { %v1154_v56 = vpop.eup %1153 }
 0xe50   :  { %506 = vrot.lane.b32.xlu0 %v1154_v56, %s1320_s2  ;;  %v1324_v56 = vmov 0  }
 0xe51   :  { %887 = vmatprep.subr.bf16.mxu0 %v1324_v56 }
 0xec2   :  { %v507_v57 = vpop.permute.xlu0 %506 }
 0xec3   :  { %v509_v58 = vmul.f32 %v1152_v52, %v507_v57  ;;  %v1091_v52 = vld [vmem:[#allocation8 + $0x10] ss:$8 sps:$4 sm:$0xff]  }
 0xec4   :  { %v1097_v57 = vld [vmem:[#allocation10 + $0x38] sm:$0xff]  }
 0xec5   :  { %v513_v59 = vpack.c.bf16 %v509_v58, %v509_v58  ;;  %v1098_v58 = vld [vmem:[#allocation10 + $0x30] sm:$0xff]  }
 0xec7   :  { %515 = vrot.lane.b32.xlu1 %v513_v59, %s1316_s1  ;;  %v1099_v59 = vld [vmem:[#allocation10 + $0x28] sm:$0xff]  }
 0xf39   :  { %v516_v60 = vpop.permute.xlu1 %515 }
 0xf3a   :  { %1057 = vmatmul.mubr.msk.bf16.vlgmr.msra.gmra.mxu1 %vm137_vm1, %v516_v60 }
 0xf3b   :  { %763 = vmatpush1.bf16.msra.mxu1 %v1085_v48  ;;  %786 = vmatprep.mubr.bf16.mxu1 %v1324_v56 }
 0xf3c   :  { %764 = vmatprep.subr.bf16.mxu1 %v1090_v50 }
 0xf3f   :  { %765 = vmatpush1.bf16.msra.mxu1 %v1088_v9 }
 0xf40   :  { %766 = vmatprep.subr.bf16.mxu1 %v1093_v51 }
 0xf43   :  { %767 = vmatpush1.bf16.msra.mxu1 %v1091_v52 }
 0xf44   :  { %768 = vmatprep.subr.bf16.mxu1 %v1096_v53 }
 0xf47   :  { %769 = vmatpush1.bf16.msra.mxu1 %v1094_v11 }
 0xffa   :  { %v554_v63 = vpop.f32.mrf.mxu1 }
 0xffb   :  { %v560_v0 = vadd.f32 %v554_v63, %v512_v62  ;;  %v1100_v62 = vld [vmem:[#allocation10 + $0x20] sm:$0xff]   ;;  %v1101_v63 = vld [vmem:[#allocation10 + $0x18] sm:$0xff]  }
 0xffc   :  { %v1058_v1 = vpop.f32.mrf.mxu1 }
 0xffd   :  { %1155 = vtanh.f32 %v560_v0  ;;  %v965_v5 = vmul.f32 -1.442695, %v560_v0  ;;  %v1102_v0 = vld [vmem:[#allocation10 + $0x10] sm:$0xff]   ;;  %v1103_v1 = vld [vmem:[#allocation10 + $0x8] sm:$0xff]  }
 0xffe   :  { %v557_v2 = vpop.f32.mrf.mxu1 }
 0xfff   :  { %1157 = vpow2.f32 %v965_v5  ;;  %v1104_v2 = vld [vmem:[#allocation10] sm:$0xff]  }
0x1000   :  { %v1059_v3 = vpop.f32.mrf.mxu1 }
0x100a   :  { %v1156_v4 = vpop.eup %1155 }
0x100b   :  { %570 = vrot.lane.b32.xlu0 %v1156_v4, %s1320_s2 }
0x100c   :  { %v1158_v6 = vpop.eup %1157 }
0x100d   :  { %v564_v7 = vadd.f32 1.0, %v1158_v6 }
0x100f   :  { %1159 = vrcp.f32 %v564_v7  ;;  %v1105_v7 = vld [vmem:[#allocation10 + $0x48] sm:$0xff]  }
0x101c   :  { %v1160_v8 = vpop.eup %1159 }
0x101d   :  { %v568_v14 = vmul.f32 %v1160_v8, %v503_v55 }
0x107d   :  { %v571_v12 = vpop.permute.xlu0 %570 }
0x107e   :  { %v573_v13 = vmul.f32 %v1160_v8, %v571_v12  ;;  %v700_v12 = vlaneseq }
0x1080   :  { %575 = vrot.lane.b32.xlu1 %v573_v13, %s1320_s2  ;;  %v701_v13 = vshrl.u32 %v700_v12, 7 }
0x10f2   :  { %v576_v15 = vpop.permute.xlu1 %575 }
0x10f3   :  { %v578_v16 = vadd.f32 %v576_v15, %v568_v14  ;;  %v702_v14 = vsub.s32 0, %v701_v13  ;;  %v698_v15 = vld [vmem:[%s1489_s4] sm:$0x3]  ;;  %s1325_s4 = smov [#allocation11]  }
0x10f4   :  { %s940_s8 = sshll.u32 %s1325_s4, 4  ;;  %s941_s8 = int_to_ptr.vmem [resolvable:$true] %s940_s8 }
0x10f5   :  { %1161 = vtanh.f32 %v578_v16  ;;  %s1283_s9 = scalar_lea.vmem %s941_s8, 128  ;;  %p1288_p12 = scmp.lt.s32.totalorder %s941_s8, %s941_s8 }
0x10f6   :  { %p1284_p11 = scmp.ne.s32.totalorder %s941_s8, %s1283_s9  ;;  %p1289_p13 = scmp.lt.s32.totalorder %s1283_s9, %s1283_s9 }
0x10f8   :  { %p1290_p0 = por %p1289_p13, %p1288_p12 }
0x10fa   :  { %p1291_p1 = pnand %p1290_p0, %p1284_p11 }
0x1102   :  { %v1162_v17 = vpop.eup %1161 }
0x1103   :  { %581 = vrot.lane.b32.xlu0 %v1162_v17, %s1320_s2  ;;  %v703_v17 = vrot.slane %v698_v15, %v702_v14 }
0x1175   :  { %v582_v18 = vpop.permute.xlu0 %581 }
0x1176   :  { %v584_v19 = vmul.f32 %v1160_v8, %v582_v18  ;;  %v1106_v8 = vld [vmem:[#allocation10 + $0x40] sm:$0xff]  }
0x1178   :  { %v588_v20 = vpack.c.bf16 %v584_v19, %v584_v19 }
0x117a   :  { %590 = vrot.lane.b32.xlu1 %v588_v20, %s1316_s1 }
0x11ec   :  { %v591_v21 = vpop.permute.xlu1 %590 }
0x11ed   :  { %1065 = vmatmul.mubr.msk.bf16.vlgmr.msra.gmra.mxu0 %vm137_vm1, %v591_v21 }
0x11ee   :  { %888 = vmatpush1.bf16.msra.mxu0 %v1097_v57 }
0x11ef   :  { %889 = vmatprep.subr.bf16.mxu0 %v1324_v56 }
0x11f2   :  { %890 = vmatpush1.bf16.msra.mxu0 %v1098_v58 }
0x11f3   :  { %891 = vmatprep.subr.bf16.mxu0 %v1324_v56 }
0x11f6   :  { %892 = vmatpush1.bf16.msra.mxu0 %v1099_v59 }
0x11f7   :  { %893 = vmatprep.subr.bf16.mxu0 %v1324_v56 }
0x11fa   :  { %894 = vmatpush1.bf16.msra.mxu0 %v1100_v62 }
0x11fb   :  { %895 = vmatprep.subr.bf16.mxu0 %v1324_v56 }
0x11fe   :  { %896 = vmatpush1.bf16.msra.mxu0 %v1101_v63 }
0x11ff   :  { %897 = vmatprep.subr.bf16.mxu0 %v1324_v56 }
0x1202   :  { %898 = vmatpush1.bf16.msra.mxu0 %v1102_v0 }
0x1203   :  { %899 = vmatprep.subr.bf16.mxu0 %v1324_v56 }
0x1206   :  { %900 = vmatpush1.bf16.msra.mxu0 %v1103_v1 }
0x1207   :  { %901 = vmatprep.subr.bf16.mxu0 %v1324_v56 }
0x120a   :  { %902 = vmatpush1.bf16.msra.mxu0 %v1104_v2 }
0x120b   :  { %915 = vmatprep.subr.bf16.mxu0 %v1324_v56 }
0x120e   :  { %916 = vmatpush2.bf16.msra.mxu0 %v1105_v7 }
0x120f   :  { %917 = vmatprep.subr.bf16.mxu0 %v1324_v56 }
0x1212   :  { %918 = vmatpush2.bf16.msra.mxu0 %v1106_v8 }
0x12ad   :  { %v629_v24 = vpop.f32.mrf.mxu0 }
0x12ae   :  { %v635_v25 = vadd.f32 %v629_v24, %v587_v22 }
0x12af   :  { %v1066_v27 = vpop.f32.mrf.mxu0 }
0x12b0   :  { %1163 = vtanh.f32 %v635_v25  ;;  %v967_v32 = vmul.f32 -1.442695, %v635_v25  ;;  %v978_v27 = vld [vmem:[%s1491_s6] ss:$0 sm:$0xff] }
0x12b1   :  { %v632_v28 = vpop.f32.mrf.mxu0  ;;  %1165 = vtanh.f32 %v661_v26 }
0x12b2   :  { %1167 = vpow2.f32 %v967_v32 }
0x12b3   :  { %v1067_v29 = vpop.f32.mrf.mxu0  ;;  %1169 = vpow2.f32 %v968_v33 }
0x12bd   :  { %v1164_v30 = vpop.eup %1163 }
0x12be   :  { %645 = vrot.lane.b32.xlu0 %v1164_v30, %s1320_s2  ;;  %v1166_v31 = vpop.eup %1165 }
0x12bf   :  { %v1168_v34 = vpop.eup %1167 }
0x12c0   :  { %v1170_v35 = vpop.eup %1169  ;;  %v639_v36 = vadd.f32 1.0, %v1168_v34 }
0x12c1   :  { %v665_v37 = vadd.f32 1.0, %v1170_v35 }
0x12c2   :  { %670 = vrot.lane.b32.xlu0 %v1166_v31, %s1320_s2  ;;  %1171 = vrcp.f32 %v639_v36 }
0x12c3   :  { %1173 = vrcp.f32 %v665_v37 }
0x12cf   :  { %v1172_v38 = vpop.eup %1171 }
0x12d0   :  { %v1174_v41 = vpop.eup %1173  ;;  %v643_v45 = vmul.f32 %v1172_v38, %v578_v16  ;;  %v706_v16 = vsub.s32 1, %v701_v13 }
0x12d2   :  { %v707_v18 = vrot.slane %v698_v15, %v706_v16 }
0x1330   :  { %v646_v39 = vpop.permute.xlu0 %645 }
0x1331   :  { %v648_v40 = vmul.f32 %v1172_v38, %v646_v39 }
0x1333   :  { %650 = vrot.lane.b32.xlu1 %v648_v40, %s1320_s2 }
0x1334   :  { %v671_v42 = vpop.permute.xlu0 %670 }
0x1335   :  { %v673_v43 = vmul.f32 %v1174_v41, %v671_v42 }
0x1337   :  { %1175 = vtanh.f32 %v673_v43 }
0x1344   :  { %v1176_v44 = vpop.eup %1175 }
0x1345   :  { %676 = vrot.lane.b32.xlu0 %v1176_v44, %s1316_s1 }
0x13a5   :  { %v651_v46 = vpop.permute.xlu1 %650 }
0x13a6   :  { %v653_v47 = vadd.f32 %v651_v46, %v643_v45 }
0x13a8   :  { %1177 = vtanh.f32 %v653_v47 }
0x13b5   :  { %v1178_v10 = vpop.eup %1177 }
0x13b6   :  { %656 = vrot.lane.b32.xlu1 %v1178_v10, %s1320_s2 }
0x13b7   :  { %v677_v54 = vpop.permute.xlu0 %676 }
0x13b8   :  { %v679_v55 = vmul.f32 %v1174_v41, %v677_v54 }
0x13ba   :  { %685 = vrot.lane.b32.xlu0 %v679_v55, %s1323_s5 }
0x1428   :  { %v657_v60 = vpop.permute.xlu1 %656 }
0x1429   :  { %v659_v61 = vmul.f32 %v1172_v38, %v657_v60 }
0x142b   :  { %681 = vrot.lane.b32.xlu1 %v659_v61, %s1316_s1 }
0x142c   :  { %v686_v3 = vpop.permute.xlu0 %685 }
0x149d   :  { %v682_v4 = vpop.permute.xlu1 %681 }
0x149e   :  { %v688_v5 = vsel %vm137_vm1, %v682_v4, %v686_v3 }
0x149f   :  { %v689_v6 = vpack.c.bf16 %v688_v5, %v688_v5 }
0x14a1   :  { %977 = vmatmul.mubr.msk.bf16.vlgmr.msra.gmra.mxu1 %vm750_vm2, %v689_v6 }
0x1561   :  { %v788_v19 = vpop.f32.mrf.mxu1 }
0x1562   :  { %v789_v20 = vadd.f32 %v788_v19, %v703_v17 }
0x1563   :  { %v790_v21 = vpop.f32.mrf.mxu1 }
0x1564   :  { %v791_v22 = vadd.f32 %v790_v21, %v707_v18  ;;  %v795_v25 = vpack.c.bf16 %v789_v20, %v789_v20 }
0x1565   :  { %v792_v23 = vpop.f32.mrf.mxu1 }
0x1566   :  { %v796_v24 = vpack.c.bf16 %v791_v22, %v791_v22 }
0x1567   :  { %v793_v26 = vpop.f32.mrf.mxu1 }
0x1568   :  { %989 = vmatprep.mubr.msk.bf16.mxu0 %vm137_vm1, %v796_v24 }
0x1569   :  { %920 = vmatmul.mubr.bf16.vlgmr.msra.gmra.mxu0 %v795_v25 }
0x1629   :  { %v921_v28 = vpop.f32.mrf.mxu0 }
0x162a   :  { %v922_v29 = vadd.f32 %v978_v27, %v921_v28 }
0x162b   :  { %v923_v30 = vpop.f32.mrf.mxu0 }
0x162c   :  { %v990_v31 = vmul.f32 -1.442695, %v922_v29 }
0x162d   :  { %v924_v32 = vpop.f32.mrf.mxu0 }
0x162e   :  { %1179 = vpow2.f32 %v990_v31 }
0x162f   :  { %v925_v33 = vpop.f32.mrf.mxu0 }
0x163b   :  { %v1180_v34 = vpop.eup %1179 }
0x163c   :  { %v930_v35 = vadd.f32 1.0, %v1180_v34 }
0x163e   :  { %1181 = vrcp.f32 %v930_v35 }
0x164b   :  { %v1182_v36 = vpop.eup %1181 }
0x164c   :  { %933 = vst [vmem:[#allocation11] sm:$0xff] %v1182_v36 }
0x164d   :  { %1294 = shalt.err (!%p1291_p1)
}
0x164e   :  { %943 = dma.vmem_to_hbm [thread:$0]  %s941_s8, 128, %s1492_s7, [#allocation4]  }
0x164f   :  { %1309 = dma.done.wait [#allocation4], 128  }
0x1650   :  { %1310 = vsyncadd [#allocation4], 4294967168 }
0x1651   :  { %947 = vsyncpa [#allocation3], 1 }
0x1652   :  { %948 = vsyncpa [#allocation6], 1 }
0x1653   :  { %949 = vsyncpa [#allocation9], 1 }
0x1654   :  { %950 = vsyncpa [#allocation4], 1 }

</bundles_post_ra>
